<compile_context>
chip_gen: v6e
topology: v6e:2x2x1
jax: 0.10.0
libtpu: 0.0.40
codegen_flags: <defaults>
</compile_context>

<pallas_src>
import functools

import numpy as np
import jax
import jax.numpy as jnp
from jax import lax
from jax.experimental import pallas as pl
from jax.experimental.pallas import tpu as pltpu

IN_FEATURES = 128
NUM_CLASSES = 2
LANES = 128
SUBLANES = 8
MAX_TILE_N = 4096     # 4096 x 128 x f32 = 2 MiB per x block (x2 double buffer)


def _round_up(n, m):
    return ((n + m - 1) // m) * m


def _cdiv(a, b):
    return (a + b - 1) // b


def _choose_tile(n):
    """Rows per grid step.  Small N -> single tile; N > 1024 -> >= 2 tiles so
    the 'parallel' grid axis can be sharded across v7x's two TensorCores.
    Tiles are 128-aligned so the transposed (1, tile_n) blocks stay
    lane-aligned."""
    if n <= 1024:
        return max(SUBLANES, _round_up(n, SUBLANES))
    num_tiles = max(2, _cdiv(n, MAX_TILE_N))
    return _round_up(_cdiv(n, num_tiles), LANES)


def _clamped_softplus(z):
    """min(softplus(z), 100) == -clamp(log(1 - sigmoid(z)), min=-100).
    Same op sequence as the kernel so the wrapper tail correction matches."""
    return jnp.minimum(jnp.maximum(z, 0.0)
                       + jnp.log(1.0 + jnp.exp(-jnp.abs(z))), 100.0)


# ---------------------------------------------------------------------------
# Kernels
# ---------------------------------------------------------------------------

def _infer_kernel(b1_ref, x_ref, w1_ref, score_ref):
    """predScore row = x @ W[1] + b[1], emitted lane-dense as (1, tile_n)."""
    t = lax.dot_general(w1_ref[...], x_ref[...],
                        dimension_numbers=(((1,), (1,)), ((), ())),
                        preferred_element_type=jnp.float32)      # (8, tile_n)
    score_ref[...] = t[0:1, :] + b1_ref[0]


def _train_kernel(scal_ref, x_ref, wd_ref, y_ref, score_ref, part_ref):
    inv_r = scal_ref[0]            # 1 / r
    db = scal_ref[1]               # b[1] - b[0]

    # d = logit1 - logit0, computed directly lane-dense: contract x's feature
    # axis against the replicated weight-difference row (q @ k^T pattern).
    t = lax.dot_general(wd_ref[...], x_ref[...],
                        dimension_numbers=(((1,), (1,)), ((), ())),
                        preferred_element_type=jnp.float32)      # (8, tile_n)
    d = t[0:1, :] + db                                           # (1, tile_n)

    # predScore[:, 1] = sigmoid(d): EUP approx reciprocal + one Newton step.
    # exp argument clamped so the Newton step never sees inf * 0 = NaN.
    e = jnp.exp(jnp.minimum(-d, 80.0))
    u = 1.0 + e
    inv = pl.reciprocal(u, approx=True)
    inv = inv * (2.0 - u * inv)                                  # one Newton step
    score_ref[...] = inv                                         # lane-dense store

    # BCE(sigmoid(d / r), y) with torch.nn.BCELoss's -100 clamp on each log.
    z = d * inv_r
    sp_pos = jnp.maximum(z, 0.0) + jnp.log(1.0 + jnp.exp(-jnp.abs(z)))
    c_pos = jnp.minimum(sp_pos, 100.0)        # -clamp(log(1 - p_r), min=-100)
    c_neg = jnp.minimum(sp_pos - z, 100.0)    # -clamp(log(p_r),     min=-100)

    y = y_ref[...]                            # (1, tile_n), float 0/1
    loss_row = c_pos + y * (c_neg - c_pos)    # y*c_neg + (1-y)*c_pos
    loss_sum = jnp.sum(loss_row)

    plabel = jnp.where(d >= 0.0, 1.0, 0.0)    # == round(sigmoid(d)) (mod ties)
    corr_sum = jnp.sum(jnp.where(plabel == y, 1.0, 0.0))

    # Lane-dense per-tile partials: lane 0 = loss sum, lane 1 = correct count.
    lane = lax.broadcasted_iota(jnp.int32, (1, 1, LANES), 2)
    part_ref[...] = jnp.where(lane == 0, loss_sum,
                              jnp.where(lane == 1, corr_sum, 0.0))


# ---------------------------------------------------------------------------
# pallas_call builders, cached per padded shape (no per-N recompiles)
# ---------------------------------------------------------------------------

@functools.lru_cache(maxsize=None)
def _infer_fn(n_pad, tile_n):
    num_tiles = n_pad // tile_n
    call = pl.pallas_call(
        _infer_kernel,
        grid=(num_tiles,),
        in_specs=[
            pl.BlockSpec(memory_space=pltpu.MemorySpace.SMEM),           # b[1]
            pl.BlockSpec((tile_n, IN_FEATURES), lambda i: (i, 0)),       # x
            pl.BlockSpec((SUBLANES, IN_FEATURES), lambda i: (0, 0)),     # W[1] rows
        ],
        out_specs=pl.BlockSpec((1, tile_n), lambda i: (0, i)),           # score^T
        out_shape=jax.ShapeDtypeStruct((1, n_pad), jnp.float32),
        compiler_params=pltpu.CompilerParams(dimension_semantics=("parallel",)),
    )
    return jax.jit(call)


@functools.lru_cache(maxsize=None)
def _train_fn(n_pad, tile_n):
    num_tiles = n_pad // tile_n
    call = pl.pallas_call(
        _train_kernel,
        grid=(num_tiles,),
        in_specs=[
            pl.BlockSpec(memory_space=pltpu.MemorySpace.SMEM),           # [1/r, b1-b0]
            pl.BlockSpec((tile_n, IN_FEATURES), lambda i: (i, 0)),       # x
            pl.BlockSpec((SUBLANES, IN_FEATURES), lambda i: (0, 0)),     # W[1]-W[0] rows
            pl.BlockSpec((1, tile_n), lambda i: (0, i)),                 # labels^T
        ],
        out_specs=(
            pl.BlockSpec((1, tile_n), lambda i: (0, i)),                 # p1^T (lane-dense)
            pl.BlockSpec((1, 1, LANES), lambda i: (i, 0, 0)),            # per-tile partials
        ),
        out_shape=(
            jax.ShapeDtypeStruct((1, n_pad), jnp.float32),
            jax.ShapeDtypeStruct((num_tiles, 1, LANES), jnp.float32),
        ),
        compiler_params=pltpu.CompilerParams(dimension_semantics=("parallel",)),
    )
    return jax.jit(call)


# ---------------------------------------------------------------------------
# Wrapper
# ---------------------------------------------------------------------------

class LossAV:
    """JAX/Pallas port of lossAV.forward (Light-ASD)."""

    def __init__(self, W, b):
        W = jnp.asarray(W, jnp.float32)        # (2, 128)
        b = jnp.asarray(b, jnp.float32)        # (2,)
        self._W = W
        self._b = b
        self._db = b[1] - b[0]                 # scalar, folded into d
        self._b1 = b[1:2]                      # (1,) SMEM scalar for inference
        # Replicated weight rows (8, 128) so the lane-dense dot_general has an
        # MXU-native LHS; cached per activation dtype (bf16 halves HBM traffic).
        self._wd_f32 = jnp.broadcast_to(W[1] - W[0], (SUBLANES, IN_FEATURES))
        self._w1_f32 = jnp.broadcast_to(W[1], (SUBLANES, IN_FEATURES))
        self._wd_cache = {}
        self._w1_cache = {}

    @staticmethod
    def _cast(cache, base, dtype):
        key = np.dtype(dtype)
        if key not in cache:
            cache[key] = base.astype(key)
        return cache[key]

    def __call__(self, x, labels=None, r=1.0):
        x2 = jnp.squeeze(x, axis=1)            # (N, 128)
        if x2.dtype != jnp.float32 and x2.dtype != jnp.bfloat16:
            x2 = x2.astype(jnp.float32)
        N = x2.shape[0]
        tile_n = _choose_tile(N)
        num_tiles = _cdiv(N, tile_n)
        n_pad = num_tiles * tile_n
        if n_pad != N:
            x2 = jnp.pad(x2, ((0, n_pad - N), (0, 0)))   # pad rows: exact zeros

        if labels is None:
            w1 = self._cast(self._w1_cache, self._w1_f32, x2.dtype)
            score = _infer_fn(n_pad, tile_n)(self._b1, x2, w1)
            # mirrors .detach().cpu().numpy() / .view(-1)
            return np.asarray(jax.device_get(score))[0, :N]

        wd = self._cast(self._wd_cache, self._wd_f32, x2.dtype)
        y = jnp.asarray(labels, jnp.float32).reshape(1, N)
        if n_pad != N:
            y = jnp.pad(y, ((0, 0), (0, n_pad - N)))
        inv_r = jnp.float32(1.0) / jnp.asarray(r, jnp.float32)
        scal = jnp.stack([inv_r, self._db]).astype(jnp.float32)   # SMEM scalars

        score_row, part = _train_fn(n_pad, tile_n)(scal, x2, wd, y)

        part = part.reshape(num_tiles, LANES)
        loss_total = jnp.sum(part[:, 0])
        corr_total = jnp.sum(part[:, 1])

        # Closed-form removal of the zero-padded rows (x = 0, y = 0 -> d = db),
        # instead of an in-kernel row mask.
        n_extra = n_pad - N
        if n_extra:
            loss_total = loss_total - n_extra * _clamped_softplus(self._db * inv_r)
            corr_total = corr_total - n_extra * jnp.where(self._db < 0.0, 1.0, 0.0)

        nloss = loss_total / jnp.float32(N)                 # BCELoss mean over true N
        p1 = score_row[0, :N]
        pred_score = jnp.stack([1.0 - p1, p1], axis=-1)     # full 2-class softmax
        pred_label = jnp.round(p1)
        return nloss, pred_score, pred_label, corr_total


# ---------------------------------------------------------------------------
# Pure-JAX reference (mirrors the PyTorch module) for validation
# ---------------------------------------------------------------------------

def _ref_forward(x, W, b, labels, r):
    x2 = jnp.squeeze(x, 1).astype(jnp.float32)
    logits = x2 @ W.T + b
    p = jax.nn.softmax(logits / r, axis=-1)[:, 1]
    y = labels.astype(jnp.float32)
    logp = jnp.maximum(jnp.log(p), -100.0)
    log1mp = jnp.maximum(jnp.log(1.0 - p), -100.0)
    nloss = -jnp.mean(y * logp + (1.0 - y) * log1mp)
    score = jax.nn.softmax(logits, axis=-1)
    plabel = jnp.round(score[:, 1])
    correct = jnp.sum((plabel == y).astype(jnp.float32))
    return nloss, score, plabel, correct, logits[:, 1]


if __name__ == "__main__":
    key = jax.random.PRNGKey(0)
    kw, kb, kx, kl, kx2, kl2 = jax.random.split(key, 6)

    # Deterministic nn.Linear(128, 2)-style init: U(-1/sqrt(128), 1/sqrt(128))
    bound = 1.0 / np.sqrt(IN_FEATURES)
    W = jax.random.uniform(kw, (NUM_CLASSES, IN_FEATURES), jnp.float32, -bound, bound)
    b = jax.random.uniform(kb, (NUM_CLASSES,), jnp.float32, -bound, bound)
    loss_av = LossAV(W, b)

    # --- small batch: single tile, padded tail handled by wrapper fix-up ---
    N = 6
    x = jax.random.normal(kx, (N, 1, IN_FEATURES), jnp.float32)
    labels = jax.random.randint(kl, (N,), 0, 2, jnp.int32)

    nloss, score, plabel, correct = loss_av(x, labels=labels, r=1.3)
    jax.block_until_ready((nloss, score, plabel, correct))

    r_loss, r_score, r_label, r_correct, r_logit1 = _ref_forward(x, W, b, labels, 1.3)
    np.testing.assert_allclose(np.asarray(nloss), np.asarray(r_loss), rtol=1e-4, atol=1e-5)
    np.testing.assert_allclose(np.asarray(score), np.asarray(r_score), rtol=2e-4, atol=5e-5)
    np.testing.assert_allclose(np.asarray(plabel), np.asarray(r_label), atol=0)
    np.testing.assert_allclose(np.asarray(correct), np.asarray(r_correct), atol=0)

    # inference path (labels=None): numpy predScore = logits[:, 1]
    infer = loss_av(x, labels=None)
    assert infer.shape == (N,)
    np.testing.assert_allclose(infer, np.asarray(r_logit1), rtol=1e-4, atol=1e-5)

    # --- multi-tile path: grid >= 2 ("parallel" axis), large padded tail ---
    N2 = 1100
    x_big = jax.random.normal(kx2, (N2, 1, IN_FEATURES), jnp.float32)
    labels_big = jax.random.randint(kl2, (N2,), 0, 2, jnp.int32)
    nloss2, score2, plabel2, correct2 = loss_av(x_big, labels=labels_big, r=0.9)
    jax.block_until_ready((nloss2, score2, plabel2, correct2))
    r2 = _ref_forward(x_big, W, b, labels_big, 0.9)
    np.testing.assert_allclose(np.asarray(nloss2), np.asarray(r2[0]), rtol=1e-4, atol=1e-5)
    np.testing.assert_allclose(np.asarray(correct2), np.asarray(r2[3]), atol=1.0)
    assert score2.shape == (N2, NUM_CLASSES) and plabel2.shape == (N2,)

    # re-calling with the same padded shape must hit the cached, jitted kernel
    nloss2b, _, _, _ = loss_av(x_big, labels=labels_big, r=0.9)
    jax.block_until_ready(nloss2b)

    # --- bf16 activations (halves HBM traffic; elementwise math stays f32) ---
    nloss_bf, score_bf, plabel_bf, correct_bf = loss_av(
        x.astype(jnp.bfloat16), labels=labels, r=1.3)
    jax.block_until_ready((nloss_bf, score_bf, plabel_bf, correct_bf))
    assert np.isfinite(float(nloss_bf)) and score_bf.shape == (N, NUM_CLASSES)

    print("KERNEL_OK")
</pallas_src>

<mosaic_0001>
module attributes {stable_mosaic.version = 11 : i64} {
  func.func @_train_kernel(%arg0: i32, %arg1: memref<2xf32, #tpu.memory_space<smem>>, %arg2: memref<8x128xf32, #tpu.memory_space<vmem>>, %arg3: memref<8x128xf32, #tpu.memory_space<vmem>>, %arg4: memref<1x8xf32, #tpu.memory_space<vmem>>, %arg5: memref<1x8xf32, #tpu.memory_space<vmem>>, %arg6: memref<1x1x128xf32, #tpu.memory_space<vmem>>) attributes {dimension_semantics = [#tpu.dimension_semantics<parallel>], iteration_bounds = array<i64: 1>, scalar_prefetch = 0 : i64, scratch_operands = 0 : i64, tpu.core_type = #tpu.core_type<tc>, window_params = [{transform_indices = @transform_0, window_bounds = array<i64: 2>}, {transform_indices = @transform_1, window_bounds = array<i64: 8, 128>}, {pipeline_mode = #tpu.pipeline_mode<synchronous>, transform_indices = @transform_2, window_bounds = array<i64: 8, 128>}, {transform_indices = @transform_3, window_bounds = array<i64: 1, 8>}, {transform_indices = @transform_4, window_bounds = array<i64: 1, 8>}, {transform_indices = @transform_5, window_bounds = array<i64: 1, 1, 128>}]} {
    %c0 = arith.constant 0 : index
    %0 = memref.load %arg1[%c0] : memref<2xf32, #tpu.memory_space<smem>>
    %c1 = arith.constant 1 : index
    %1 = memref.load %arg1[%c1] : memref<2xf32, #tpu.memory_space<smem>>
    %c0_0 = arith.constant 0 : index
    %c0_1 = arith.constant 0 : index
    %2 = vector.load %arg3[%c0_0, %c0_1] : memref<8x128xf32, #tpu.memory_space<vmem>>, vector<8x128xf32>
    %c0_2 = arith.constant 0 : index
    %c0_3 = arith.constant 0 : index
    %3 = vector.load %arg2[%c0_2, %c0_3] : memref<8x128xf32, #tpu.memory_space<vmem>>, vector<8x128xf32>
    %cst = arith.constant dense<0.000000e+00> : vector<8x8xf32>
    %4 = tpu.matmul %2, %3, %cst {dimension_numbers = #tpu.dot_dimension_numbers<[1], [1], [0], [0], [0, 0, 1, 0], [], []>} : vector<8x128xf32>, vector<8x128xf32>, vector<8x8xf32> -> vector<8x8xf32>
    %5 = vector.extract_strided_slice %4 {offsets = [0, 0], sizes = [1, 8], strides = [1, 1]} : vector<8x8xf32> to vector<1x8xf32>
    %6 = vector.broadcast %1 : f32 to vector<1x8xf32>
    %7 = arith.addf %5, %6 : vector<1x8xf32>
    %cst_4 = arith.constant 0.000000e+00 : f32
    %8 = vector.broadcast %cst_4 : f32 to vector<1x8xf32>
    %9 = arith.subf %8, %7 : vector<1x8xf32>
    %cst_5 = arith.constant 8.000000e+01 : f32
    %10 = vector.broadcast %cst_5 : f32 to vector<1x8xf32>
    %11 = arith.minimumf %9, %10 : vector<1x8xf32>
    %12 = math.exp %11 : vector<1x8xf32>
    %cst_6 = arith.constant 1.000000e+00 : f32
    %13 = vector.broadcast %cst_6 : f32 to vector<1x8xf32>
    %14 = arith.addf %13, %12 : vector<1x8xf32>
    %15 = tpu.reciprocal %14 {approx = true} : vector<1x8xf32> -> vector<1x8xf32>
    %16 = arith.mulf %14, %15 : vector<1x8xf32>
    %cst_7 = arith.constant 2.000000e+00 : f32
    %17 = vector.broadcast %cst_7 : f32 to vector<1x8xf32>
    %18 = arith.subf %17, %16 : vector<1x8xf32>
    %19 = arith.mulf %15, %18 : vector<1x8xf32>
    %c0_8 = arith.constant 0 : index
    %c0_9 = arith.constant 0 : index
    %20 = vector.load %arg5[%c0_8, %c0_9] : memref<1x8xf32, #tpu.memory_space<vmem>>, vector<1x8xf32>
    tpu.vector_store %arg5[%c0_8, %c0_9], %19 {strides = array<i32>} : memref<1x8xf32, #tpu.memory_space<vmem>>, vector<1x8xf32>,
    %21 = vector.broadcast %0 : f32 to vector<1x8xf32>
    %22 = arith.mulf %7, %21 : vector<1x8xf32>
    %cst_10 = arith.constant 0.000000e+00 : f32
    %23 = vector.broadcast %cst_10 : f32 to vector<1x8xf32>
    %24 = arith.maximumf %22, %23 : vector<1x8xf32>
    %25 = math.absf %22 : vector<1x8xf32>
    %cst_11 = arith.constant 0.000000e+00 : f32
    %26 = vector.broadcast %cst_11 : f32 to vector<1x8xf32>
    %27 = arith.subf %26, %25 : vector<1x8xf32>
    %28 = math.exp %27 : vector<1x8xf32>
    %cst_12 = arith.constant 1.000000e+00 : f32
    %29 = vector.broadcast %cst_12 : f32 to vector<1x8xf32>
    %30 = arith.addf %29, %28 : vector<1x8xf32>
    %31 = math.log %30 : vector<1x8xf32>
    %32 = arith.addf %24, %31 : vector<1x8xf32>
    %cst_13 = arith.constant 1.000000e+02 : f32
    %33 = vector.broadcast %cst_13 : f32 to vector<1x8xf32>
    %34 = arith.minimumf %32, %33 : vector<1x8xf32>
    %35 = arith.subf %32, %22 : vector<1x8xf32>
    %cst_14 = arith.constant 1.000000e+02 : f32
    %36 = vector.broadcast %cst_14 : f32 to vector<1x8xf32>
    %37 = arith.minimumf %35, %36 : vector<1x8xf32>
    %c0_15 = arith.constant 0 : index
    %c0_16 = arith.constant 0 : index
    %38 = vector.load %arg4[%c0_15, %c0_16] : memref<1x8xf32, #tpu.memory_space<vmem>>, vector<1x8xf32>
    %39 = arith.subf %37, %34 : vector<1x8xf32>
    %40 = arith.mulf %38, %39 : vector<1x8xf32>
    %41 = arith.addf %34, %40 : vector<1x8xf32>
    %42 = vector.shape_cast %41 : vector<1x8xf32> to vector<1x1x8xf32>
    %cst_17 = arith.constant dense<0.000000e+00> : vector<1xf32>
    %43 = vector.multi_reduction <add>, %42, %cst_17 [1, 2] : vector<1x1x8xf32> to vector<1xf32>
    %44 = vector.shape_cast %43 : vector<1xf32> to vector<1x1x1xf32>
    %45 = vector.extract %44[0, 0, 0] : f32 from vector<1x1x1xf32>
    %cst_18 = arith.constant 0.000000e+00 : f32
    %46 = vector.broadcast %cst_18 : f32 to vector<1x8xf32>
    %47 = arith.cmpf oge, %7, %46 : vector<1x8xf32>
    %cst_19 = arith.constant 1.000000e+00 : f32
    %cst_20 = arith.constant 0.000000e+00 : f32
    %48 = vector.broadcast %cst_19 : f32 to vector<1x8xf32>
    %49 = vector.broadcast %cst_20 : f32 to vector<1x8xf32>
    %50 = arith.select %47, %48, %49 : vector<1x8xi1>, vector<1x8xf32>
    %51 = arith.cmpf oeq, %50, %38 : vector<1x8xf32>
    %cst_21 = arith.constant 1.000000e+00 : f32
    %cst_22 = arith.constant 0.000000e+00 : f32
    %52 = vector.broadcast %cst_21 : f32 to vector<1x8xf32>
    %53 = vector.broadcast %cst_22 : f32 to vector<1x8xf32>
    %54 = arith.select %51, %52, %53 : vector<1x8xi1>, vector<1x8xf32>
    %55 = vector.shape_cast %54 : vector<1x8xf32> to vector<1x1x8xf32>
    %cst_23 = arith.constant dense<0.000000e+00> : vector<1xf32>
    %56 = vector.multi_reduction <add>, %55, %cst_23 [1, 2] : vector<1x1x8xf32> to vector<1xf32>
    %57 = vector.shape_cast %56 : vector<1xf32> to vector<1x1x1xf32>
    %58 = vector.extract %57[0, 0, 0] : f32 from vector<1x1x1xf32>
    %59 = tpu.iota {dimensions = array<i32: 2>} : vector<1x1x128xi32>
    %c0_i32 = arith.constant 0 : i32
    %60 = vector.broadcast %c0_i32 : i32 to vector<1x1x128xi32>
    %61 = arith.cmpi eq, %59, %60 : vector<1x1x128xi32>
    %c1_i32 = arith.constant 1 : i32
    %62 = vector.broadcast %c1_i32 : i32 to vector<1x1x128xi32>
    %63 = arith.cmpi eq, %59, %62 : vector<1x1x128xi32>
    %cst_24 = arith.constant 0.000000e+00 : f32
    %64 = vector.broadcast %58 : f32 to vector<1x1x128xf32>
    %65 = vector.broadcast %cst_24 : f32 to vector<1x1x128xf32>
    %66 = arith.select %63, %64, %65 : vector<1x1x128xi1>, vector<1x1x128xf32>
    %67 = vector.broadcast %45 : f32 to vector<1x1x128xf32>
    %68 = arith.select %61, %67, %66 : vector<1x1x128xi1>, vector<1x1x128xf32>
    %c0_25 = arith.constant 0 : index
    %c0_26 = arith.constant 0 : index
    %c0_27 = arith.constant 0 : index
    %69 = vector.load %arg6[%c0_25, %c0_26, %c0_27] : memref<1x1x128xf32, #tpu.memory_space<vmem>>, vector<1x1x128xf32>
    tpu.vector_store %arg6[%c0_25, %c0_26, %c0_27], %68 {strides = array<i32>} : memref<1x1x128xf32, #tpu.memory_space<vmem>>, vector<1x1x128xf32>,
    return
  }
  func.func @transform_0(%arg0: i32) -> i32 {
    %c0_i32 = arith.constant 0 : i32
    %c0_i32_0 = arith.constant 0 : i32
    return %c0_i32 : i32
  }
  func.func @transform_1(%arg0: i32) -> (i32, i32) {
    %c0_i32 = arith.constant 0 : i32
    %c0_i32_0 = arith.constant 0 : i32
    return %arg0, %c0_i32 : i32, i32
  }
  func.func @transform_2(%arg0: i32) -> (i32, i32) {
    %c0_i32 = arith.constant 0 : i32
    %c0_i32_0 = arith.constant 0 : i32
    %c0_i32_1 = arith.constant 0 : i32
    return %c0_i32, %c0_i32_0 : i32, i32
  }
  func.func @transform_3(%arg0: i32) -> (i32, i32) {
    %c0_i32 = arith.constant 0 : i32
    %c0_i32_0 = arith.constant 0 : i32
    return %c0_i32, %arg0 : i32, i32
  }
  func.func @transform_4(%arg0: i32) -> (i32, i32) {
    %c0_i32 = arith.constant 0 : i32
    %c0_i32_0 = arith.constant 0 : i32
    return %c0_i32, %arg0 : i32, i32
  }
  func.func @transform_5(%arg0: i32) -> (i32, i32, i32) {
    %c0_i32 = arith.constant 0 : i32
    %c0_i32_0 = arith.constant 0 : i32
    %c0_i32_1 = arith.constant 0 : i32
    return %arg0, %c0_i32, %c0_i32_0 : i32, i32, i32
  }
}

</mosaic_0001>

<bundles_post_ra>
// kernel: tpu_custom_call.1
= control target key start
LH: loop header
LB: loop body
LE: loop exit
PB: predicated region body
PF: predicated region fallthrough
CT: control target
= control target key end

     0   :  { %11 = vsyncpa [#allocation5], 0  ;;  %s405_s0 = inlined_call_operand.hbm [shape: f32[2], index: 0, kind: input, shape index: {}]   ;;  %s406_s1 = inlined_call_operand.hbm [shape: f32[8,128], index: 1, kind: input, shape index: {}]   ;;  %s407_s2 = inlined_call_operand.hbm [shape: f32[8,128], index: 2, kind: input, shape index: {}]   ;;  %s408_s3 = inlined_call_operand.vmem [shape: f32[1,8], index: 3, kind: input, shape index: {}]   ;;  %s409_s4 = inlined_call_operand.hbm [shape: f32[1,8], index: 4, kind: output, shape index: {0}]   ;;  %s410_s5 = inlined_call_operand.hbm [shape: f32[1,1,128], index: 5, kind: output, shape index: {1}]  }
   0x1   :  { %12 = vsyncpa [#allocation3], 0 }
   0x2   :  { %13 = vsyncpa [#allocation8], 0 }
   0x3   :  { %14 = vsyncpa [#allocation4], 0 }
   0x4   :  { %15 = vsyncpa [#allocation11], 0  ;;  %s350_s18 = smov [#allocation2]   ;;  %s351_s21 = smov [#allocation6]  }
   0x5   :  { %23 = dma.hbm_to_smem %s405_s0, 16, %s350_s18, [#allocation5]  }
   0x6   :  { %s30_s22 = sshll.u32 %s351_s21, 4  ;;  %s352_s23 = smov [#allocation7]   ;;  %s31_s22 = int_to_ptr.vmem [resolvable:$true] %s30_s22 }
   0x7   :  { %s40_s24 = sshll.u32 %s352_s23, 4  ;;  %s268_s25 = scalar_lea.vmem %s31_s22, 128  ;;  %s41_s24 = int_to_ptr.vmem [resolvable:$true] %s40_s24 }
   0x8   :  { %p269_p0 = scmp.ne.s32.totalorder %s31_s22, %s268_s25  ;;  %p273_p1 = scmp.lt.s32.totalorder %s31_s22, %s31_s22 }
   0x9   :  { %p274_p2 = scmp.lt.s32.totalorder %s268_s25, %s268_s25 }
   0xb   :  { %p275_p3 = por %p274_p2, %p273_p1 }
   0xd   :  { %p276_p4 = pnand %p275_p3, %p269_p0 }
   0xf   :  { %279 = shalt.err (!%p276_p4)
}
  0x10   :  { %33 = dma.hbm_to_vmem [thread:$0]  %s406_s1, 128, %s31_s22, [#allocation3]  }
  0x11   :  { %s288_s28 = scalar_lea.vmem %s41_s24, 128  ;;  %p293_p6 = scmp.lt.s32.totalorder %s41_s24, %s41_s24 }
  0x12   :  { %p289_p5 = scmp.ne.s32.totalorder %s41_s24, %s288_s28  ;;  %p294_p7 = scmp.lt.s32.totalorder %s288_s28, %s288_s28 }
  0x14   :  { %p295_p8 = por %p294_p7, %p293_p6 }
  0x16   :  { %p296_p9 = pnand %p295_p8, %p289_p5 }
  0x18   :  { %299 = shalt.err (!%p296_p9)
}
  0x19   :  { %43 = dma.hbm_to_vmem [thread:$0]  %s407_s2, 128, %s41_s24, [#allocation8]  }
  0x1a   :  { %340 = dma.done.wait [#allocation5], 16  }
  0x1b   :  { %341 = vsyncadd [#allocation5], 4294967280 }
  0x1c   :  { %342 = dma.done.wait [#allocation3], 128  }
  0x1d   :  { %343 = vsyncadd [#allocation3], 4294967168 }
  0x1e   :  { %344 = dma.done.wait [#allocation8], 128  }
  0x1f   :  { %345 = vsyncadd [#allocation8], 4294967168 }
  0x20   :  { %55 = sfence }
  0x21   :  { %v59_v0 = vld [vmem:[#allocation6] sm:$0xff]  ;;  %v353_v1 = vmov 0.0   ;;  %vm354_vm0 = vmmov 0   ;;  %v58_v2 = vld [vmem:[#allocation7] sm:$0xff]  ;;  %s225_s1 = sld [smem:[#allocation2 + $0x1]]  ;;  %vm141_vm1 = vcmask 57344  }
  0x22   :  { %228 = vmatprep.subr.mxu0 %v353_v1  ;;  %230 = vmatprep.mubr.msk.f32.mxu0 %vm354_vm0, %v353_v1  ;;  %s56_s30 = sld [smem:[#allocation2]]  ;;  %v157_v31 = vld [vmem:[%s408_s3] sm:$0x1]  ;;  %s355_s7 = smov [#allocation9]  }
  0x23   :  { %229 = vmatpush3.xpose.msra.mxu0 %v59_v0  ;;  %s200_s8 = sshll.u32 %s355_s7, 4  ;;  %s201_s8 = int_to_ptr.vmem [resolvable:$true] %s200_s8 }
  0x24   :  { %s300_s9 = scalar_lea.vmem %s201_s8, 16  ;;  %s304_s10 = scalar_lea.vmem %s201_s8, 32 }
  0x25   :  { %p301_p10 = scmp.ne.s32.totalorder %s201_s8, %s300_s9  ;;  %p305_p11 = scmp.lt.s32.totalorder %s201_s8, %s201_s8 }
  0x26   :  { %231 = vmatmul.mubr.f32.vlgmr.msra.gmra.mxu0 %v58_v2  ;;  %p306_p12 = scmp.lt.s32.totalorder %s304_s10, %s300_s9 }
  0x27   :  { %v130_v3 = vstv %s225_s1 }
  0x28   :  { %v143_v5 = vstv %s56_s30  ;;  %p307_p13 = por %p306_p12, %p305_p11 }
  0x2a   :  { %p308_p0 = pnand %p307_p13, %p301_p10 }
  0xe6   :  { %v126_v4 = vpop.f32.mrf.mxu0 }
  0xe7   :  { %v131_v6 = vadd.f32 %v130_v3, %v126_v4 }
  0xe8   :  { %v232_v7 = vpop.f32.mrf.mxu0 }
  0xe9   :  { %v132_v8 = vsub.f32 0.0, %v131_v6  ;;  %v144_v9 = vmul.f32 %v143_v5, %v131_v6  ;;  %vm171_vm2 = vcmp.ge.f32.partialorder %v131_v6, 0.0 }
  0xea   :  { %v172_v32 = vsel %vm171_vm2, 1.0, %v353_v1 }
  0xeb   :  { %v133_v10 = vmin.f32 %v132_v8, 80.0  ;;  %v146_v11 = vand.u32 2147483647, %v144_v9  ;;  %v145_v22 = vmax.f32 %v144_v9, 0.0  ;;  %vm173_vm3 = vcmp.eq.f32.partialorder %v172_v32, %v157_v31 }
  0xec   :  { %v174_v36 = vsel %vm173_vm3, 1.0, %v353_v1 }
  0xed   :  { %v134_v12 = vmul.f32 1.442695, %v133_v10  ;;  %v147_v13 = vsub.f32 0.0, %v146_v11  ;;  %v175_v37 = vsel %vm141_vm1, %v174_v36, 0.0 }
  0xef   :  { %244 = vpow2.f32 %v134_v12  ;;  %v148_v14 = vmul.f32 1.442695, %v147_v13 }
  0xf1   :  { %246 = vpow2.f32 %v148_v14 }
  0xfc   :  { %v245_v15 = vpop.eup %244 }
  0xfd   :  { %v136_v16 = vadd.f32 1.0, %v245_v15 }
  0xfe   :  { %v247_v17 = vpop.eup %246 }
  0xff   :  { %v150_v18 = vadd.f32 1.0, %v247_v17  ;;  %248 = vrcp.f32 %v136_v16 }
 0x101   :  { %250 = vlog2.f32 %v150_v18 }
 0x10c   :  { %v249_v19 = vpop.eup %248 }
 0x10d   :  { %v138_v20 = vmul.f32 %v249_v19, %v136_v16 }
 0x10e   :  { %v251_v21 = vpop.eup %250 }
 0x10f   :  { %v152_v23 = vmul.f32 0.6931472, %v251_v21  ;;  %v139_v24 = vsub.f32 2.0, %v138_v20 }
 0x111   :  { %v153_v25 = vadd.f32 %v152_v23, %v145_v22  ;;  %v140_v26 = vmul.f32 %v249_v19, %v139_v24 }
 0x113   :  { %v155_v27 = vsub.f32 %v153_v25, %v144_v9  ;;  %142 = vst.msk [vmem:[#allocation9] sm:$0x1] %vm141_vm1, %v140_v26  ;;  %v154_v28 = vmin.f32 %v153_v25, 100.0 }
 0x115   :  { %v156_v29 = vmin.f32 %v155_v27, 100.0 }
 0x117   :  { %v158_v30 = vsub.f32 %v156_v29, %v154_v28 }
 0x119   :  { %v159_v33 = vmul.f32 %v158_v30, %v157_v31 }
 0x11b   :  { %v160_v34 = vadd.f32 %v159_v33, %v154_v28 }
 0x11d   :  { %v161_v35 = vsel %vm141_vm1, %v160_v34, 0.0 }
 0x11e   :  { %162 = vadd.xlane.f32.xlu0 %v161_v35 }
 0x122   :  { %176 = vadd.xlane.f32.xlu0 %v175_v37 }
 0x123   :  { %311 = shalt.err (!%p308_p0)
}
 0x124   :  { %203 = dma.vmem_to_hbm [thread:$0]  %s201_s8, 16, %s409_s4, [#allocation4]   ;;  %v185_v52 = vlaneseq }
 0x125   :  { %s356_s4 = smov [#allocation10]  }
 0x126   :  { %v186_v53 = vand.u32 127, %v185_v52  ;;  %s210_s13 = sshll.u32 %s356_s4, 4  ;;  %s211_s13 = int_to_ptr.vmem [resolvable:$true] %s210_s13 }
 0x127   :  { %s320_s15 = scalar_lea.vmem %s211_s13, 16  ;;  %s324_s16 = scalar_lea.vmem %s211_s13, 32 }
 0x128   :  { %vm188_vm4 = vcmp.eq.s32.totalorder %v186_v53, 1  ;;  %vm187_vm5 = vcmp.eq.s32.totalorder %v186_v53, 0  ;;  %p321_p1 = scmp.ne.s32.totalorder %s211_s13, %s320_s15  ;;  %p325_p2 = scmp.lt.s32.totalorder %s211_s13, %s211_s13 }
 0x129   :  { %p326_p3 = scmp.lt.s32.totalorder %s324_s16, %s320_s15 }
 0x12b   :  { %p327_p4 = por %p326_p3, %p325_p2 }
 0x12d   :  { %p328_p5 = pnand %p327_p4, %p321_p1 }
 0x1a7   :  { %v163_v38 = vpop.xlane.xlu0 %162 }
 0x1a8   :  { %v164_v39 = vrot.slane %v163_v38, 4 }
 0x1aa   :  { %v165_v40 = vadd.f32 %v164_v39, %v163_v38 }
 0x1ab   :  { %v177_v41 = vpop.xlane.xlu0 %176 }
 0x1ac   :  { %v166_v42 = vrot.slane %v165_v40, 2  ;;  %v178_v43 = vrot.slane %v177_v41, 4 }
 0x1ae   :  { %v179_v44 = vadd.f32 %v178_v43, %v177_v41  ;;  %v167_v45 = vadd.f32 %v166_v42, %v165_v40 }
 0x1b0   :  { %v180_v46 = vrot.slane %v179_v44, 2  ;;  %v168_v47 = vrot.slane %v167_v45, 1 }
 0x1b2   :  { %v181_v48 = vadd.f32 %v180_v46, %v179_v44  ;;  %v169_v49 = vadd.f32 %v168_v47, %v167_v45 }
 0x1b4   :  { %233 = vpush %v169_v49  ;;  %v182_v50 = vrot.slane %v181_v48, 1 }
 0x1b6   :  { %v183_v51 = vadd.f32 %v182_v50, %v181_v48 }
 0x1b8   :  { %235 = vpush %v183_v51 }
 0x1e5   :  { %s234_s12 = spop %233 }
 0x1e6   :  { %v191_v55 = vstv %s234_s12 }
 0x1e9   :  { %s236_s14 = spop %235 }
 0x1ea   :  { %v189_v54 = vstv %s236_s14 }
 0x1eb   :  { %v190_v56 = vsel %vm188_vm4, %v189_v54, 0.0 }
 0x1ec   :  { %v192_v57 = vsel %vm187_vm5, %v191_v55, %v190_v56 }
 0x1ed   :  { %193 = vst [vmem:[#allocation10] sm:$0x1] %v192_v57 }
 0x1ee   :  { %331 = shalt.err (!%p328_p5)
}
 0x1ef   :  { %213 = dma.vmem_to_hbm [thread:$0]  %s211_s13, 16, %s410_s5, [#allocation11]  }
 0x1f0   :  { %346 = dma.done.wait [#allocation4], 16  }
 0x1f1   :  { %347 = vsyncadd [#allocation4], 4294967280 }
 0x1f2   :  { %348 = dma.done.wait [#allocation11], 16  }
 0x1f3   :  { %349 = vsyncadd [#allocation11], 4294967280 }
 0x1f4   :  { %220 = vsyncpa [#allocation3], 1 }
 0x1f5   :  { %221 = vsyncpa [#allocation8], 1 }
 0x1f6   :  { %222 = vsyncpa [#allocation4], 1 }
 0x1f7   :  { %223 = vsyncpa [#allocation11], 1 }
 0x1f8   :  { %224 = vsyncpa [#allocation5], 1 }

</bundles_post_ra>
